<compile_context>
chip_gen: v5e
topology: v5e:2x2
jax: 0.10.0
libtpu: 0.0.40
codegen_flags: <defaults>
</compile_context>

<pallas_src>
import math

import jax
import jax.numpy as jnp
from jax import lax
from jax.experimental import pallas as pl
from jax.experimental.pallas import tpu as pltpu

LANES = 128


def _round_up(x, m):
    return ((x + m - 1) // m) * m


def _detect_num_cores():
    """Best-effort TensorCore count per Pallas device (perf-only; 1 is safe)."""
    try:
        info = pltpu.get_tpu_info()
        for attr in ("num_cores", "core_count", "num_tensorcores",
                     "tensorcores_per_chip"):
            v = getattr(info, attr, None)
            if isinstance(v, int) and 1 <= v <= 8:
                return v
    except Exception:
        pass
    try:
        kind = jax.local_devices()[0].device_kind.lower()
        if any(tag in kind for tag in ("v4", "v5p", "v7")):
            return 2
    except Exception:
        pass
    return 1


def _make_kernel(*, tile_rows, k_steps, n_blocks, n_rows, group, num_chunks):
    """Kernel factory; all shape parameters are Python (trace-time) constants."""
    n_groups = tile_rows // group
    full_last = (n_blocks * tile_rows == n_rows)      # last block fully valid
    exact_grid = (num_chunks * k_steps == n_blocks)   # no dummy grid points
    limit_last = n_rows - (n_blocks - 1) * tile_rows  # valid rows in last block

    def _accumulate(pred_ref, tgt_ref, sq_ref, ab_ref, masked):
        # Stream the (tile_rows, 128) block in `group`-row slices so the f32
        # upcast / square / abs intermediates stay in vregs (never hit VMEM).
        def body(g, carry):
            sq, ab = carry
            start = g * group
            r = start if isinstance(start, int) else pl.multiple_of(start, group)
            p = pred_ref[pl.ds(r, group), :].astype(jnp.float32)
            t = tgt_ref[pl.ds(r, group), :].astype(jnp.float32)
            d = p - t
            if masked:
                rows = r + lax.broadcasted_iota(jnp.int32, (group, LANES), 0)
                d = jnp.where(rows < limit_last, d, 0.0)
            d3 = d.reshape(group // 8, 8, LANES)   # vreg-aligned regroup
            sq = sq + jnp.sum(d3 * d3, axis=0)
            ab = ab + jnp.sum(jnp.abs(d3), axis=0)
            return sq, ab

        init = (jnp.zeros((8, LANES), jnp.float32),
                jnp.zeros((8, LANES), jnp.float32))
        sq, ab = lax.fori_loop(0, n_groups, body, init,
                               unroll=min(n_groups, 8))
        sq_ref[...] += sq[None]
        ab_ref[...] += ab[None]

    def kernel(pred_ref, tgt_ref, sq_ref, ab_ref):
        c = pl.program_id(0)
        k = pl.program_id(1)

        @pl.when(k == 0)
        def _init():
            sq_ref[...] = jnp.zeros_like(sq_ref)
            ab_ref[...] = jnp.zeros_like(ab_ref)

        blk = c * k_steps + k
        if exact_grid and full_last:
            # Every grid point is a unique, fully-valid block: no branching.
            _accumulate(pred_ref, tgt_ref, sq_ref, ab_ref, masked=False)
        else:
            last = n_blocks - 1

            @pl.when(blk < last)
            def _full_blocks():
                _accumulate(pred_ref, tgt_ref, sq_ref, ab_ref, masked=False)

            @pl.when(blk == last)
            def _last_block():
                _accumulate(pred_ref, tgt_ref, sq_ref, ab_ref,
                            masked=not full_last)
            # blk > last (dummy grid point from an uneven chunk split): skip.

    return kernel


def sum_of_losses(pred, target, *, num_chunks=None, block_bytes=2 << 20):
    """MSE(pred, target) + L1(pred, target), fused in one Pallas streaming pass.

    bf16/f16 inputs should be passed natively (no wrapper upcast): they are
    upcast to f32 inside the kernel, halving HBM traffic on the mem-bound path.
    """
    assert pred.shape == target.shape, "pred/target shape mismatch"
    assert pred.dtype == target.dtype, "pred/target dtype mismatch"
    assert jnp.issubdtype(pred.dtype, jnp.floating), "floating dtypes only"
    itemsize = jnp.dtype(pred.dtype).itemsize
    assert itemsize in (2, 4), "f32/bf16/f16 supported (sub-16-bit not handled)"

    n_elems = int(pred.size)
    inv_n = 1.0 / n_elems

    p_flat = pred.reshape(-1)   # free (row-major bitcast)
    t_flat = target.reshape(-1)

    n_rows = n_elems // LANES
    main = n_rows * LANES
    rem = n_elems - main

    # Sub-128-element lane tail: plain jnp (tiny, avoids any array padding).
    if rem:
        dt = p_flat[main:].astype(jnp.float32) - t_flat[main:].astype(jnp.float32)
        tail_sq = jnp.sum(dt * dt)
        tail_ab = jnp.sum(jnp.abs(dt))
    else:
        tail_sq = jnp.float32(0.0)
        tail_ab = jnp.float32(0.0)

    if n_rows == 0:
        # Too small for a lane-dense block; handled fully above.
        return (tail_sq + tail_ab) * jnp.float32(inv_n)

    # Free reshape when n_elems is 128-divisible; otherwise a one-off prefix
    # copy only for lane-misaligned sizes (no full-array padding ever).
    p2 = (p_flat if rem == 0 else p_flat[:main]).reshape(n_rows, LANES)
    t2 = (t_flat if rem == 0 else t_flat[:main]).reshape(n_rows, LANES)

    # Block sizing: ~2 MiB per input block -> 2 inputs x 2 pipeline buffers
    # = 8 MiB, inside every generation's scoped-VMEM default (no vmem_limit).
    align = 8 if itemsize == 4 else 16
    max_rows = max(align,
                   (min(block_bytes, 3 << 20) // (LANES * itemsize) // align) * align)
    tile_rows = min(max_rows, _round_up(n_rows, align))
    n_blocks = pl.cdiv(n_rows, tile_rows)

    if num_chunks is None:
        num_chunks = _detect_num_cores()
    num_chunks = max(1, min(int(num_chunks), n_blocks))
    k_steps = pl.cdiv(n_blocks, num_chunks)

    group = math.gcd(tile_rows, 64)   # rows per in-kernel fori step (>= 8)

    kernel = _make_kernel(tile_rows=tile_rows, k_steps=k_steps,
                          n_blocks=n_blocks, n_rows=n_rows, group=group,
                          num_chunks=num_chunks)

    if num_chunks * k_steps == n_blocks:
        in_map = lambda c, k: (c * k_steps + k, 0)
    else:
        # Uneven chunk split: clamp dummy grid points onto the last real block
        # (their DMA stays in-bounds; the kernel skips accumulating them).
        def in_map(c, k):
            return (jnp.minimum(c * k_steps + k, n_blocks - 1), 0)

    out_map = lambda c, k: (c, 0, 0)

    sq_part, ab_part = pl.pallas_call(
        kernel,
        out_shape=(
            jax.ShapeDtypeStruct((num_chunks, 8, LANES), jnp.float32),
            jax.ShapeDtypeStruct((num_chunks, 8, LANES), jnp.float32),
        ),
        grid_spec=pltpu.PrefetchScalarGridSpec(
            num_scalar_prefetch=0,
            grid=(num_chunks, k_steps),
            in_specs=[
                pl.BlockSpec((tile_rows, LANES), in_map),
                pl.BlockSpec((tile_rows, LANES), in_map),
            ],
            out_specs=[
                pl.BlockSpec((1, 8, LANES), out_map),
                pl.BlockSpec((1, 8, LANES), out_map),
            ],
        ),
        compiler_params=pltpu.CompilerParams(
            dimension_semantics=("parallel", "arbitrary")),
    )(p2, t2)

    total_sq = jnp.sum(sq_part) + tail_sq   # l1: MSE numerator
    total_ab = jnp.sum(ab_part) + tail_ab   # l2: L1 numerator
    return (total_sq + total_ab) * jnp.float32(inv_n)


if __name__ == "__main__":
    key = jax.random.PRNGKey(0)
    ks = jax.random.split(key, 8)

    def ref_loss(p, t):
        d = p.astype(jnp.float32) - t.astype(jnp.float32)
        return jnp.mean(d * d) + jnp.mean(jnp.abs(d))

    # 1) Small NCHW f32 (typical conv-style input for this loss module).
    pred = jax.random.normal(ks[0], (2, 4, 16, 16), dtype=jnp.float32)
    target = jax.random.normal(ks[1], (2, 4, 16, 16), dtype=jnp.float32)
    out = jax.block_until_ready(sum_of_losses(pred, target))
    assert jnp.allclose(out, ref_loss(pred, target), rtol=1e-4, atol=1e-5), out

    # 2) Native bf16 inputs (no wrapper upcast).
    pred = jax.random.normal(ks[2], (2, 8, 32, 32), dtype=jnp.bfloat16)
    target = jax.random.normal(ks[3], (2, 8, 32, 32), dtype=jnp.bfloat16)
    out = jax.block_until_ready(sum_of_losses(pred, target))
    assert jnp.allclose(out, ref_loss(pred, target), rtol=1e-4, atol=1e-4), out

    # 3) Lane-misaligned element count (jnp tail + masked partial block).
    pred = jax.random.normal(ks[4], (3, 5, 7, 11), dtype=jnp.float32)
    target = jax.random.normal(ks[5], (3, 5, 7, 11), dtype=jnp.float32)
    out = jax.block_until_ready(sum_of_losses(pred, target))
    assert jnp.allclose(out, ref_loss(pred, target), rtol=1e-4, atol=1e-5), out

    # 4) Multi-block, two chunks, partial last block; then an uneven 3-block
    #    split across 2 chunks (exercises the clamped dummy grid point).
    pred = jax.random.normal(ks[6], (856, 128), dtype=jnp.float32)
    target = jax.random.normal(ks[7], (856, 128), dtype=jnp.float32)
    out = jax.block_until_ready(
        sum_of_losses(pred, target, num_chunks=2, block_bytes=256 * 128 * 4))
    assert jnp.allclose(out, ref_loss(pred, target), rtol=1e-4, atol=1e-5), out
    out = jax.block_until_ready(
        sum_of_losses(pred[:768], target[:768], num_chunks=2,
                      block_bytes=256 * 128 * 4))
    assert jnp.allclose(out, ref_loss(pred[:768], target[:768]),
                        rtol=1e-4, atol=1e-5), out

    print("KERNEL_OK")
</pallas_src>

<mosaic_0001>
module attributes {stable_mosaic.version = 11 : i64} {
  func.func @kernel(%arg0: i32, %arg1: i32, %arg2: memref<16x128xf32, #tpu.memory_space<vmem>>, %arg3: memref<16x128xf32, #tpu.memory_space<vmem>>, %arg4: memref<1x8x128xf32, #tpu.memory_space<vmem>>, %arg5: memref<1x8x128xf32, #tpu.memory_space<vmem>>) attributes {dimension_semantics = [#tpu.dimension_semantics<parallel>, #tpu.dimension_semantics<arbitrary>], iteration_bounds = array<i64: 1, 1>, scalar_prefetch = 0 : i64, scratch_operands = 0 : i64, tpu.core_type = #tpu.core_type<tc>, window_params = [{transform_indices = @transform_0, window_bounds = array<i64: 16, 128>}, {transform_indices = @transform_1, window_bounds = array<i64: 16, 128>}, {transform_indices = @transform_2, window_bounds = array<i64: 1, 8, 128>}, {transform_indices = @transform_3, window_bounds = array<i64: 1, 8, 128>}]} {
    %c0_i32 = arith.constant 0 : i32
    %0 = arith.cmpi eq, %arg1, %c0_i32 : i32
    %1 = arith.extui %0 : i1 to i32
    %c0_i32_0 = arith.constant 0 : i32
    %2 = arith.cmpi ne, %1, %c0_i32_0 : i32
    scf.if %2 {
      %cst_18 = arith.constant 0.000000e+00 : f32
      %27 = vector.broadcast %cst_18 : f32 to vector<1x8x128xf32>
      %c0_19 = arith.constant 0 : index
      %c0_20 = arith.constant 0 : index
      %c0_21 = arith.constant 0 : index
      %28 = vector.load %arg4[%c0_19, %c0_20, %c0_21] : memref<1x8x128xf32, #tpu.memory_space<vmem>>, vector<1x8x128xf32>
      tpu.vector_store %arg4[%c0_19, %c0_20, %c0_21], %27 {strides = array<i32>} : memref<1x8x128xf32, #tpu.memory_space<vmem>>, vector<1x8x128xf32>,
      %cst_22 = arith.constant 0.000000e+00 : f32
      %29 = vector.broadcast %cst_22 : f32 to vector<1x8x128xf32>
      %c0_23 = arith.constant 0 : index
      %c0_24 = arith.constant 0 : index
      %c0_25 = arith.constant 0 : index
      %30 = vector.load %arg5[%c0_23, %c0_24, %c0_25] : memref<1x8x128xf32, #tpu.memory_space<vmem>>, vector<1x8x128xf32>
      tpu.vector_store %arg5[%c0_23, %c0_24, %c0_25], %29 {strides = array<i32>} : memref<1x8x128xf32, #tpu.memory_space<vmem>>, vector<1x8x128xf32>,
    } else {
    }
    %cst = arith.constant 0.000000e+00 : f32
    %3 = vector.broadcast %cst : f32 to vector<8x128xf32>
    %cst_1 = arith.constant 0.000000e+00 : f32
    %4 = vector.broadcast %cst_1 : f32 to vector<8x128xf32>
    %c0_i32_2 = arith.constant 0 : i32
    %c16_i32 = arith.constant 16 : i32
    %5 = arith.muli %c0_i32_2, %c16_i32 : i32
    %6 = tpu.assume_multiple %5, 16 : i32
    %7 = arith.index_cast %6 : i32 to index
    %c0 = arith.constant 0 : index
    %8 = vector.load %arg2[%7, %c0] : memref<16x128xf32, #tpu.memory_space<vmem>>, vector<16x128xf32>
    %9 = arith.index_cast %6 : i32 to index
    %c0_3 = arith.constant 0 : index
    %10 = vector.load %arg3[%9, %c0_3] : memref<16x128xf32, #tpu.memory_space<vmem>>, vector<16x128xf32>
    %11 = arith.subf %8, %10 : vector<16x128xf32>
    %12 = vector.shape_cast %11 : vector<16x128xf32> to vector<2x8x128xf32>
    %13 = arith.mulf %12, %12 : vector<2x8x128xf32>
    %cst_4 = arith.constant dense<0.000000e+00> : vector<8x128xf32>
    %14 = vector.multi_reduction <add>, %13, %cst_4 [0] : vector<2x8x128xf32> to vector<8x128xf32>
    %15 = arith.addf %3, %14 : vector<8x128xf32>
    %16 = math.absf %12 : vector<2x8x128xf32>
    %cst_5 = arith.constant dense<0.000000e+00> : vector<8x128xf32>
    %17 = vector.multi_reduction <add>, %16, %cst_5 [0] : vector<2x8x128xf32> to vector<8x128xf32>
    %18 = arith.addf %4, %17 : vector<8x128xf32>
    %c1_i32 = arith.constant 1 : i32
    %c0_6 = arith.constant 0 : index
    %c0_7 = arith.constant 0 : index
    %c0_8 = arith.constant 0 : index
    %19 = vector.load %arg4[%c0_6, %c0_7, %c0_8] : memref<1x8x128xf32, #tpu.memory_space<vmem>>, vector<1x8x128xf32>
    %20 = vector.shape_cast %15 : vector<8x128xf32> to vector<1x8x128xf32>
    %21 = arith.addf %19, %20 : vector<1x8x128xf32>
    %c0_9 = arith.constant 0 : index
    %c0_10 = arith.constant 0 : index
    %c0_11 = arith.constant 0 : index
    %22 = vector.load %arg4[%c0_9, %c0_10, %c0_11] : memref<1x8x128xf32, #tpu.memory_space<vmem>>, vector<1x8x128xf32>
    tpu.vector_store %arg4[%c0_9, %c0_10, %c0_11], %21 {strides = array<i32>} : memref<1x8x128xf32, #tpu.memory_space<vmem>>, vector<1x8x128xf32>,
    %c0_12 = arith.constant 0 : index
    %c0_13 = arith.constant 0 : index
    %c0_14 = arith.constant 0 : index
    %23 = vector.load %arg5[%c0_12, %c0_13, %c0_14] : memref<1x8x128xf32, #tpu.memory_space<vmem>>, vector<1x8x128xf32>
    %24 = vector.shape_cast %18 : vector<8x128xf32> to vector<1x8x128xf32>
    %25 = arith.addf %23, %24 : vector<1x8x128xf32>
    %c0_15 = arith.constant 0 : index
    %c0_16 = arith.constant 0 : index
    %c0_17 = arith.constant 0 : index
    %26 = vector.load %arg5[%c0_15, %c0_16, %c0_17] : memref<1x8x128xf32, #tpu.memory_space<vmem>>, vector<1x8x128xf32>
    tpu.vector_store %arg5[%c0_15, %c0_16, %c0_17], %25 {strides = array<i32>} : memref<1x8x128xf32, #tpu.memory_space<vmem>>, vector<1x8x128xf32>,
    return
  }
  func.func @transform_0(%arg0: i32, %arg1: i32) -> (i32, i32) {
    %c1_i32 = arith.constant 1 : i32
    %0 = arith.muli %arg0, %c1_i32 : i32
    %1 = arith.addi %0, %arg1 : i32
    %c0_i32 = arith.constant 0 : i32
    %c0_i32_0 = arith.constant 0 : i32
    return %1, %c0_i32 : i32, i32
  }
  func.func @transform_1(%arg0: i32, %arg1: i32) -> (i32, i32) {
    %c1_i32 = arith.constant 1 : i32
    %0 = arith.muli %arg0, %c1_i32 : i32
    %1 = arith.addi %0, %arg1 : i32
    %c0_i32 = arith.constant 0 : i32
    %c0_i32_0 = arith.constant 0 : i32
    return %1, %c0_i32 : i32, i32
  }
  func.func @transform_2(%arg0: i32, %arg1: i32) -> (i32, i32, i32) {
    %c0_i32 = arith.constant 0 : i32
    %c0_i32_0 = arith.constant 0 : i32
    %c0_i32_1 = arith.constant 0 : i32
    return %arg0, %c0_i32, %c0_i32_0 : i32, i32, i32
  }
  func.func @transform_3(%arg0: i32, %arg1: i32) -> (i32, i32, i32) {
    %c0_i32 = arith.constant 0 : i32
    %c0_i32_0 = arith.constant 0 : i32
    %c0_i32_1 = arith.constant 0 : i32
    return %arg0, %c0_i32, %c0_i32_0 : i32, i32, i32
  }
}

</mosaic_0001>

<bundles_post_ra>
// kernel: tpu_custom_call.1
= control target key start
LH: loop header
LB: loop body
LE: loop exit
PB: predicated region body
PF: predicated region fallthrough
CT: control target
= control target key end

     0   :  { %9 = vsyncpa [#allocation3], 0  ;;  %s268_s0 = inlined_call_operand.hbm [shape: f32[16,128], index: 0, kind: input, shape index: {}]   ;;  %s269_s1 = inlined_call_operand.hbm [shape: f32[16,128], index: 1, kind: input, shape index: {}]   ;;  %s270_s2 = inlined_call_operand.hbm [shape: f32[1,8,128], index: 2, kind: output, shape index: {0}]   ;;  %s271_s3 = inlined_call_operand.hbm [shape: f32[1,8,128], index: 3, kind: output, shape index: {1}]  }
   0x1   :  { %10 = vsyncpa [#allocation6], 0 }
   0x2   :  { %11 = vsyncpa [#allocation4], 0 }
   0x3   :  { %12 = vsyncpa [#allocation9], 0  ;;  %s21_s14 = sshll.u32 %s268_s0, 4  ;;  %s230_s15 = smov [#allocation2]   ;;  %s22_s14 = int_to_ptr.hbm [resolvable:$true] %s21_s14 }
   0x4   :  { %s23_s16 = sshll.u32 %s230_s15, 4  ;;  %s38_s19 = sshll.u32 %s269_s1, 4  ;;  %s24_s16 = int_to_ptr.vmem [resolvable:$true] %s23_s16  ;;  %s39_s19 = int_to_ptr.hbm [resolvable:$true] %s38_s19 }
   0x5   :  { %s231_s20 = smov 128   ;;  %s232_s21 = smov 8  }
   0x6   :  { %29 = dma.hbm_to_vmem [thread:$0]  %s22_s14, 256, %s24_s16, [#allocation3], %s231_s20, %s231_s20, %s232_s21  }
   0x7   :  { %s233_s22 = smov [#allocation5]  }
   0x8   :  { %s40_s23 = sshll.u32 %s233_s22, 4  ;;  %s41_s23 = int_to_ptr.vmem [resolvable:$true] %s40_s23 }
   0x9   :  { %46 = dma.hbm_to_vmem [thread:$0]  %s39_s19, 256, %s41_s23, [#allocation6], %s231_s20, %s231_s20, %s232_s21  }
   0xa   :  { %222 = dma.done.wait [#allocation3], 256  }
   0xb   :  { %223 = vsyncadd [#allocation3], 4294967040 }
   0xc   :  { %224 = dma.done.wait [#allocation6], 256  }
   0xd   :  { %225 = vsyncadd [#allocation6], 4294967040  ;;  %v65_v0 = vld [vmem:[#allocation2] sm:$0xff]  ;;  %v66_v1 = vld [vmem:[#allocation2 + $0x8] sm:$0xff]  ;;  %s234_s0 = smov [#allocation7]   ;;  %s92_s26 = sshll.u32 %s270_s2, 4  ;;  %s93_s26 = int_to_ptr.hbm [resolvable:$true] %s92_s26 }
   0xe   :  { %v67_v2 = vld [vmem:[#allocation5] sm:$0xff]  ;;  %v68_v3 = vld [vmem:[#allocation5 + $0x8] sm:$0xff]  ;;  %s90_s1 = sshll.u32 %s234_s0, 4  ;;  %s235_s27 = smov [#allocation8]   ;;  %s91_s1 = int_to_ptr.vmem [resolvable:$true] %s90_s1 }
   0xf   :  { %v69_v4 = vsub.f32 %v65_v0, %v67_v2  ;;  %v70_v5 = vsub.f32 %v66_v1, %v68_v3  ;;  %s101_s28 = sshll.u32 %s235_s27, 4  ;;  %s103_s4 = sshll.u32 %s271_s3, 4  ;;  %s102_s28 = int_to_ptr.vmem [resolvable:$true] %s101_s28  ;;  %s104_s4 = int_to_ptr.hbm [resolvable:$true] %s103_s4 }
  0x11   :  { %v71_v6 = vmul.f32 %v69_v4, %v69_v4  ;;  %v75_v7 = vand.u32 2147483647, %v69_v4  ;;  %v72_v8 = vmul.f32 %v70_v5, %v70_v5  ;;  %v76_v9 = vand.u32 2147483647, %v70_v5 }
  0x13   :  { %v73_v10 = vadd.f32 %v72_v8, %v71_v6  ;;  %v77_v11 = vadd.f32 %v76_v9, %v75_v7 }
  0x15   :  { %81 = vst [vmem:[#allocation7] sm:$0xff] %v73_v10 }
  0x16   :  { %84 = vst [vmem:[#allocation8] sm:$0xff] %v77_v11  ;;  %95 = dma.vmem_to_hbm [thread:$0]  %s91_s1, 128, %s93_s26, [#allocation4]  }
  0x17   :  { %106 = dma.vmem_to_hbm [thread:$0]  %s102_s28, 128, %s104_s4, [#allocation9]  }
  0x18   :  { %226 = dma.done.wait [#allocation4], 128  }
  0x19   :  { %227 = vsyncadd [#allocation4], 4294967168 }
  0x1a   :  { %228 = dma.done.wait [#allocation9], 128  }
  0x1b   :  { %229 = vsyncadd [#allocation9], 4294967168 }
  0x1c   :  { %115 = vsyncpa [#allocation3], 1 }
  0x1d   :  { %116 = vsyncpa [#allocation6], 1 }
  0x1e   :  { %117 = vsyncpa [#allocation4], 1 }
  0x1f   :  { %118 = vsyncpa [#allocation9], 1 }

</bundles_post_ra>
